<compile_context>
chip_gen: v6e
topology: v6e:2x2x1
jax: 0.10.0
libtpu: 0.0.40
codegen_flags: <defaults>
</compile_context>

<pallas_src>
import numpy as np
import jax
import jax.numpy as jnp
from jax.experimental import pallas as pl
from jax.experimental.pallas import tpu as pltpu

HIDDEN = 256
LANE = 128
_HIGHEST = jax.lax.Precision.HIGHEST


# ----------------------------- kernel -------------------------------------

def rainbow_kernel(x_ref, w1_ref, b1_ref, wt_ref, bt_ref, wh_ref, bh_ref,
                   s_ref, out_ref):
    f32 = jnp.float32
    bf16 = jnp.bfloat16

    # fc1 + ReLU: bf16 operands on the MXU, f32 accumulation, f32 epilogue.
    h = jnp.dot(x_ref[...].astype(bf16), w1_ref[...],
                preferred_element_type=f32) + b1_ref[...]
    h = jnp.maximum(h, 0.0)

    # fused noisy adv|value trunk + ReLU      (B, 256) @ (256, 512)
    t = jnp.dot(h.astype(bf16), wt_ref[...],
                preferred_element_type=f32) + bt_ref[...]
    t = jnp.maximum(t, 0.0)   # cols [0:256]=adv trunk, [256:512]=value trunk

    # fused block-diagonal noisy heads with the dueling combine folded in
    # offline (w_head @ C): produces the (padded, lane-dense) logits directly.
    logits = jnp.dot(t.astype(bf16), wh_ref[...],
                     preferred_element_type=f32) + bh_ref[...]

    # softmax over atoms within each action segment.
    # A per-row max is a valid shift for every segment (softmax is shift
    # invariant per segment). The denom clamp guards a fully-underflowed
    # segment against 0/0 NaN.
    # TODO(synk): at trained / Atari-scale logit spreads switch to a true
    # per-segment max and a factored segment-sum (S = P @ P^T).
    m = jnp.max(logits, axis=-1, keepdims=True)
    e = jnp.exp(logits - m)
    denom = jnp.dot(e.astype(bf16), s_ref[...],   # per-segment sums, all lanes
                    preferred_element_type=f32)
    denom = jnp.maximum(denom, 1e-30)
    out_ref[...] = e * pl.reciprocal(denom, approx=True)   # full-width store


# ----------------------------- wrapper -------------------------------------

def _pick_batch_tile(B, block_b):
    # Prefer >=2 batch tiles (uses both TensorCores on v7x) with tb a multiple
    # of 8, while keeping tb large enough to amortize per-step overhead.
    if B >= 2 * block_b and B % block_b == 0:
        return block_b
    if B >= 128 and B % 2 == 0 and (B // 2) % 8 == 0:
        return B // 2
    return B


def rainbow_forward(x, params, *, n_actions, n_atoms, block_b=256):
    B, n_states = x.shape
    AZ = n_actions * n_atoms
    AZp = params["w_head"].shape[1]          # lane-padded logits width

    tb = _pick_batch_tile(B, block_b)
    assert B % tb == 0
    grid = (B // tb,)

    def full(arr):   # grid-invariant block: whole array, same block every step
        return pl.BlockSpec(arr.shape, lambda i: (0, 0))
        # NOTE: pipeline_mode=pl.Buffered(1) would halve these blocks' VMEM;
        # unnecessary at these sizes (VMEM is nowhere near the limit).

    out2d = pl.pallas_call(
        rainbow_kernel,
        out_shape=jax.ShapeDtypeStruct((B, AZp), jnp.float32),
        grid=grid,
        in_specs=[
            pl.BlockSpec((tb, n_states), lambda i: (i, 0)),
            full(params["w1"]), full(params["b1"]),
            full(params["w_trunk"]), full(params["b_trunk"]),
            full(params["w_head"]), full(params["b_head"]),
            full(params["s_mat"]),
        ],
        out_specs=pl.BlockSpec((tb, AZp), lambda i: (i, 0)),
        compiler_params=pltpu.CompilerParams(
            dimension_semantics=("parallel",)),   # batch axis -> both TCs
    )(
        x,
        params["w1"], params["b1"],
        params["w_trunk"], params["b_trunk"],
        params["w_head"], params["b_head"],
        params["s_mat"],
    )
    return out2d[:, :AZ].reshape(B, n_actions, n_atoms)


# ---------------- parameter setup (plain JAX glue) ----------------

def _round_up(x, m):
    return ((x + m - 1) // m) * m


def _f(x):
    return jnp.sign(x) * jnp.sqrt(jnp.abs(x))


def make_noisy_layer(key, n_in, n_out):
    """Return (W^T (in,out), b (1,out)) with effective weights mu + sigma*eps."""
    k1, k2, k3, k4 = jax.random.split(key, 4)
    bound = 1.0 / np.sqrt(n_in)
    mu_w = jax.random.uniform(k1, (n_out, n_in), minval=-bound, maxval=bound,
                              dtype=jnp.float32)
    sigma_w = jnp.full((n_out, n_in), 0.1 / np.sqrt(n_in), dtype=jnp.float32)
    mu_b = jax.random.uniform(k2, (n_out,), minval=-bound, maxval=bound,
                              dtype=jnp.float32)
    sigma_b = jnp.full((n_out,), 0.1 / np.sqrt(n_out), dtype=jnp.float32)
    eps_i = _f(jax.random.normal(k3, (n_in,), dtype=jnp.float32))
    eps_j = _f(jax.random.normal(k4, (n_out,), dtype=jnp.float32))
    W = mu_w + sigma_w * jnp.outer(eps_j, eps_i)        # (out, in)
    b = mu_b + sigma_b * eps_j                          # (out,)
    return W.T, b.reshape(1, n_out)


def _combine_matrix(n_actions, n_atoms):
    """C (A*Z+Z, A*Z): [adv | value] @ C = adv - mean_a(adv) + value."""
    A, Z = n_actions, n_atoms
    AZ = A * Z
    C = np.zeros((AZ + Z, AZ), np.float32)
    col_atom = np.arange(AZ) % Z
    row_atom = np.arange(AZ) % Z
    same_atom = (row_atom[:, None] == col_atom[None, :]).astype(np.float32)
    C[:AZ] = np.eye(AZ, dtype=np.float32) - same_atom / A
    C[AZ:] = (np.arange(Z)[:, None] == col_atom[None, :]).astype(np.float32)
    return jnp.asarray(C)


def _segsum_matrix_padded(n_atoms, width):
    """S (width, width): e @ S = per-action-segment sums broadcast over the
    segment.  Padded columns (index >= A*Z) land in their own segments and
    never mix with real ones."""
    seg = np.arange(width) // n_atoms
    return jnp.asarray((seg[:, None] == seg[None, :]).astype(np.float32))


def make_params(key, n_states, n_actions, n_atoms):
    k_fc1, k_a, k_v, k_adv, k_val = jax.random.split(key, 5)
    AZ = n_actions * n_atoms
    AZp = _round_up(AZ, LANE)

    # fc1: orthogonal init with gain sqrt(2), zero bias (as in the module)
    w1 = jax.nn.initializers.orthogonal(scale=np.sqrt(2.0))(
        k_fc1, (HIDDEN, n_states), jnp.float32).T          # (in, out)

    wa, ba = make_noisy_layer(k_a, HIDDEN, HIDDEN)
    wv, bv = make_noisy_layer(k_v, HIDDEN, HIDDEN)
    wadv, badv = make_noisy_layer(k_adv, HIDDEN, AZ)
    wval, bval = make_noisy_layer(k_val, HIDDEN, n_atoms)

    # fused trunk (256, 512): cols [0:256]=adv, [256:512]=value
    w_trunk = jnp.concatenate([wa, wv], axis=1)
    b_trunk = jnp.concatenate([ba, bv], axis=1)

    # block-diagonal heads (512, A*Z + Z) kept in f32 for the fold + reference
    w_head = jnp.zeros((2 * HIDDEN, AZ + n_atoms), jnp.float32)
    w_head = w_head.at[:HIDDEN, :AZ].set(wadv)
    w_head = w_head.at[HIDDEN:, AZ:].set(wval)
    b_head = jnp.concatenate([badv, bval], axis=1)

    # Fold the dueling-combine matrix C into the head weights in f32 offline,
    # zero-pad to a lane-dense width, then cast to bf16.
    C = _combine_matrix(n_actions, n_atoms)                       # (AZ+Z, AZ)
    w_head_c = jnp.dot(w_head, C, precision=_HIGHEST)             # (512, AZ)
    b_head_c = jnp.dot(b_head, C, precision=_HIGHEST)             # (1, AZ)
    w_head_c = jnp.pad(w_head_c, ((0, 0), (0, AZp - AZ)))
    b_head_c = jnp.pad(b_head_c, ((0, 0), (0, AZp - AZ)))

    # TODO(synk): for production A*Z (>= ~512) replace the dense segment-sum
    # matrix with the factored P @ P^T form (two skinny matmuls).
    s_mat = _segsum_matrix_padded(n_atoms, AZp)                   # (AZp, AZp)

    return {
        # kernel arguments (matmul weights bf16, biases f32)
        "w1": w1.astype(jnp.bfloat16),
        "b1": jnp.zeros((1, HIDDEN), jnp.float32),
        "w_trunk": w_trunk.astype(jnp.bfloat16),
        "b_trunk": b_trunk,
        "w_head": w_head_c.astype(jnp.bfloat16),   # C folded in, lane-padded
        "b_head": b_head_c,
        "s_mat": s_mat.astype(jnp.bfloat16),       # 0/1 -> exact in bf16
        # f32 un-folded copies used only by the pure-JAX reference
        "w_head_raw": w_head,
        "b_head_raw": b_head,
    }


# ---------------- pure-JAX reference (same effective weights) ----------------

def rainbow_reference(x, p, *, n_actions, n_atoms):
    """Mirrors the PyTorch module structure with the same bf16-stored weights
    and bf16 MXU inputs (f32 accumulation), but the un-folded head weights and
    an explicit dueling combine + jax.nn.softmax."""
    B = x.shape[0]
    AZ = n_actions * n_atoms
    bf16, f32 = jnp.bfloat16, jnp.float32

    def mm(a, w):
        return jnp.dot(a.astype(bf16), w.astype(bf16), preferred_element_type=f32)

    h = jax.nn.relu(mm(x, p["w1"]) + p["b1"])
    trunk = jax.nn.relu(mm(h, p["w_trunk"]) + p["b_trunk"])
    a_h, v_h = trunk[:, :HIDDEN], trunk[:, HIDDEN:]
    adv = (mm(a_h, p["w_head_raw"][:HIDDEN, :AZ]) + p["b_head_raw"][:, :AZ]
           ).reshape(B, n_actions, n_atoms)
    value = (mm(v_h, p["w_head_raw"][HIDDEN:, AZ:]) + p["b_head_raw"][:, AZ:]
             ).reshape(B, 1, n_atoms)
    logits = value + adv - adv.mean(axis=1, keepdims=True)
    return jax.nn.softmax(logits, axis=-1)


if __name__ == "__main__":
    B, N_STATES, N_ACTIONS, N_ATOMS = 2, 8, 4, 16

    key = jax.random.PRNGKey(0)
    k_params, k_x = jax.random.split(key)
    params = make_params(k_params, N_STATES, N_ACTIONS, N_ATOMS)
    x = jax.random.normal(k_x, (B, N_STATES), dtype=jnp.float32)

    out = rainbow_forward(x, params, n_actions=N_ACTIONS, n_atoms=N_ATOMS)
    out = jax.block_until_ready(out)

    ref = rainbow_reference(x, params, n_actions=N_ACTIONS, n_atoms=N_ATOMS)
    assert out.shape == (B, N_ACTIONS, N_ATOMS)
    np.testing.assert_allclose(np.asarray(out), np.asarray(ref),
                               rtol=2e-2, atol=2e-3)
    print("KERNEL_OK")
</pallas_src>

<mosaic_0001>
module attributes {stable_mosaic.version = 11 : i64} {
  func.func @rainbow_kernel(%arg0: i32, %arg1: memref<2x8xf32, #tpu.memory_space<vmem>>, %arg2: memref<8x256xbf16, #tpu.memory_space<vmem>>, %arg3: memref<1x256xf32, #tpu.memory_space<vmem>>, %arg4: memref<256x512xbf16, #tpu.memory_space<vmem>>, %arg5: memref<1x512xf32, #tpu.memory_space<vmem>>, %arg6: memref<512x128xbf16, #tpu.memory_space<vmem>>, %arg7: memref<1x128xf32, #tpu.memory_space<vmem>>, %arg8: memref<128x128xbf16, #tpu.memory_space<vmem>>, %arg9: memref<2x128xf32, #tpu.memory_space<vmem>>) attributes {dimension_semantics = [#tpu.dimension_semantics<parallel>], iteration_bounds = array<i64: 1>, scalar_prefetch = 0 : i64, scratch_operands = 0 : i64, tpu.core_type = #tpu.core_type<tc>, window_params = [{transform_indices = @transform_0, window_bounds = array<i64: 2, 8>}, {pipeline_mode = #tpu.pipeline_mode<synchronous>, transform_indices = @transform_1, window_bounds = array<i64: 8, 256>}, {pipeline_mode = #tpu.pipeline_mode<synchronous>, transform_indices = @transform_2, window_bounds = array<i64: 1, 256>}, {pipeline_mode = #tpu.pipeline_mode<synchronous>, transform_indices = @transform_3, window_bounds = array<i64: 256, 512>}, {pipeline_mode = #tpu.pipeline_mode<synchronous>, transform_indices = @transform_4, window_bounds = array<i64: 1, 512>}, {pipeline_mode = #tpu.pipeline_mode<synchronous>, transform_indices = @transform_5, window_bounds = array<i64: 512, 128>}, {pipeline_mode = #tpu.pipeline_mode<synchronous>, transform_indices = @transform_6, window_bounds = array<i64: 1, 128>}, {pipeline_mode = #tpu.pipeline_mode<synchronous>, transform_indices = @transform_7, window_bounds = array<i64: 128, 128>}, {transform_indices = @transform_8, window_bounds = array<i64: 2, 128>}]} {
    %c0 = arith.constant 0 : index
    %c0_0 = arith.constant 0 : index
    %0 = vector.load %arg1[%c0, %c0_0] : memref<2x8xf32, #tpu.memory_space<vmem>>, vector<2x8xf32>
    %1 = arith.truncf %0 : vector<2x8xf32> to vector<2x8xbf16>
    %c0_1 = arith.constant 0 : index
    %c0_2 = arith.constant 0 : index
    %2 = vector.load %arg2[%c0_1, %c0_2] : memref<8x256xbf16, #tpu.memory_space<vmem>>, vector<8x256xbf16>
    %cst = arith.constant dense<0.000000e+00> : vector<2x256xf32>
    %3 = tpu.matmul %1, %2, %cst {dimension_numbers = #tpu.dot_dimension_numbers<[1], [0], [0], [1], [0, 0, 1, 1], [], []>} : vector<2x8xbf16>, vector<8x256xbf16>, vector<2x256xf32> -> vector<2x256xf32>
    %c0_3 = arith.constant 0 : index
    %c0_4 = arith.constant 0 : index
    %4 = vector.load %arg3[%c0_3, %c0_4] : memref<1x256xf32, #tpu.memory_space<vmem>>, vector<1x256xf32>
    %5 = vector.broadcast %4 : vector<1x256xf32> to vector<2x256xf32>
    %6 = arith.addf %3, %5 : vector<2x256xf32>
    %cst_5 = arith.constant 0.000000e+00 : f32
    %7 = vector.broadcast %cst_5 : f32 to vector<2x256xf32>
    %8 = arith.maximumf %6, %7 : vector<2x256xf32>
    %9 = arith.truncf %8 : vector<2x256xf32> to vector<2x256xbf16>
    %c0_6 = arith.constant 0 : index
    %c0_7 = arith.constant 0 : index
    %10 = vector.load %arg4[%c0_6, %c0_7] : memref<256x512xbf16, #tpu.memory_space<vmem>>, vector<256x512xbf16>
    %cst_8 = arith.constant dense<0.000000e+00> : vector<2x512xf32>
    %11 = tpu.matmul %9, %10, %cst_8 {dimension_numbers = #tpu.dot_dimension_numbers<[1], [0], [0], [1], [0, 0, 1, 1], [], []>} : vector<2x256xbf16>, vector<256x512xbf16>, vector<2x512xf32> -> vector<2x512xf32>
    %c0_9 = arith.constant 0 : index
    %c0_10 = arith.constant 0 : index
    %12 = vector.load %arg5[%c0_9, %c0_10] : memref<1x512xf32, #tpu.memory_space<vmem>>, vector<1x512xf32>
    %13 = vector.broadcast %12 : vector<1x512xf32> to vector<2x512xf32>
    %14 = arith.addf %11, %13 : vector<2x512xf32>
    %cst_11 = arith.constant 0.000000e+00 : f32
    %15 = vector.broadcast %cst_11 : f32 to vector<2x512xf32>
    %16 = arith.maximumf %14, %15 : vector<2x512xf32>
    %17 = arith.truncf %16 : vector<2x512xf32> to vector<2x512xbf16>
    %c0_12 = arith.constant 0 : index
    %c0_13 = arith.constant 0 : index
    %18 = vector.load %arg6[%c0_12, %c0_13] : memref<512x128xbf16, #tpu.memory_space<vmem>>, vector<512x128xbf16>
    %cst_14 = arith.constant dense<0.000000e+00> : vector<2x128xf32>
    %19 = tpu.matmul %17, %18, %cst_14 {dimension_numbers = #tpu.dot_dimension_numbers<[1], [0], [0], [1], [0, 0, 1, 1], [], []>} : vector<2x512xbf16>, vector<512x128xbf16>, vector<2x128xf32> -> vector<2x128xf32>
    %c0_15 = arith.constant 0 : index
    %c0_16 = arith.constant 0 : index
    %20 = vector.load %arg7[%c0_15, %c0_16] : memref<1x128xf32, #tpu.memory_space<vmem>>, vector<1x128xf32>
    %21 = vector.broadcast %20 : vector<1x128xf32> to vector<2x128xf32>
    %22 = arith.addf %19, %21 : vector<2x128xf32>
    %cst_17 = arith.constant dense<0xFF800000> : vector<2xf32>
    %23 = vector.multi_reduction <maximumf>, %22, %cst_17 [1] : vector<2x128xf32> to vector<2xf32>
    %24 = vector.shape_cast %23 : vector<2xf32> to vector<2x1xf32>
    %25 = vector.broadcast %24 : vector<2x1xf32> to vector<2x128xf32>
    %26 = arith.subf %22, %25 : vector<2x128xf32>
    %27 = math.exp %26 : vector<2x128xf32>
    %28 = arith.truncf %27 : vector<2x128xf32> to vector<2x128xbf16>
    %c0_18 = arith.constant 0 : index
    %c0_19 = arith.constant 0 : index
    %29 = vector.load %arg8[%c0_18, %c0_19] : memref<128x128xbf16, #tpu.memory_space<vmem>>, vector<128x128xbf16>
    %cst_20 = arith.constant dense<0.000000e+00> : vector<2x128xf32>
    %30 = tpu.matmul %28, %29, %cst_20 {dimension_numbers = #tpu.dot_dimension_numbers<[1], [0], [0], [1], [0, 0, 1, 1], [], []>} : vector<2x128xbf16>, vector<128x128xbf16>, vector<2x128xf32> -> vector<2x128xf32>
    %cst_21 = arith.constant 1.000000e-30 : f32
    %31 = vector.broadcast %cst_21 : f32 to vector<2x128xf32>
    %32 = arith.maximumf %30, %31 : vector<2x128xf32>
    %33 = tpu.reciprocal %32 {approx = true} : vector<2x128xf32> -> vector<2x128xf32>
    %34 = arith.mulf %27, %33 : vector<2x128xf32>
    %c0_22 = arith.constant 0 : index
    %c0_23 = arith.constant 0 : index
    %35 = vector.load %arg9[%c0_22, %c0_23] : memref<2x128xf32, #tpu.memory_space<vmem>>, vector<2x128xf32>
    tpu.vector_store %arg9[%c0_22, %c0_23], %34 {strides = array<i32>} : memref<2x128xf32, #tpu.memory_space<vmem>>, vector<2x128xf32>,
    return
  }
  func.func @transform_0(%arg0: i32) -> (i32, i32) {
    %c0_i32 = arith.constant 0 : i32
    %c0_i32_0 = arith.constant 0 : i32
    return %arg0, %c0_i32 : i32, i32
  }
  func.func @transform_1(%arg0: i32) -> (i32, i32) {
    %c0_i32 = arith.constant 0 : i32
    %c0_i32_0 = arith.constant 0 : i32
    %c0_i32_1 = arith.constant 0 : i32
    return %c0_i32, %c0_i32_0 : i32, i32
  }
  func.func @transform_2(%arg0: i32) -> (i32, i32) {
    %c0_i32 = arith.constant 0 : i32
    %c0_i32_0 = arith.constant 0 : i32
    %c0_i32_1 = arith.constant 0 : i32
    return %c0_i32, %c0_i32_0 : i32, i32
  }
  func.func @transform_3(%arg0: i32) -> (i32, i32) {
    %c0_i32 = arith.constant 0 : i32
    %c0_i32_0 = arith.constant 0 : i32
    %c0_i32_1 = arith.constant 0 : i32
    return %c0_i32, %c0_i32_0 : i32, i32
  }
  func.func @transform_4(%arg0: i32) -> (i32, i32) {
    %c0_i32 = arith.constant 0 : i32
    %c0_i32_0 = arith.constant 0 : i32
    %c0_i32_1 = arith.constant 0 : i32
    return %c0_i32, %c0_i32_0 : i32, i32
  }
  func.func @transform_5(%arg0: i32) -> (i32, i32) {
    %c0_i32 = arith.constant 0 : i32
    %c0_i32_0 = arith.constant 0 : i32
    %c0_i32_1 = arith.constant 0 : i32
    return %c0_i32, %c0_i32_0 : i32, i32
  }
  func.func @transform_6(%arg0: i32) -> (i32, i32) {
    %c0_i32 = arith.constant 0 : i32
    %c0_i32_0 = arith.constant 0 : i32
    %c0_i32_1 = arith.constant 0 : i32
    return %c0_i32, %c0_i32_0 : i32, i32
  }
  func.func @transform_7(%arg0: i32) -> (i32, i32) {
    %c0_i32 = arith.constant 0 : i32
    %c0_i32_0 = arith.constant 0 : i32
    %c0_i32_1 = arith.constant 0 : i32
    return %c0_i32, %c0_i32_0 : i32, i32
  }
  func.func @transform_8(%arg0: i32) -> (i32, i32) {
    %c0_i32 = arith.constant 0 : i32
    %c0_i32_0 = arith.constant 0 : i32
    return %arg0, %c0_i32 : i32, i32
  }
}

</mosaic_0001>

<bundles_post_ra>
// kernel: tpu_custom_call.1
= control target key start
LH: loop header
LB: loop body
LE: loop exit
PB: predicated region body
PF: predicated region fallthrough
CT: control target
= control target key end

     0   :  { %13 = vsyncpa [#allocation3], 0  ;;  %s1713_s0 = inlined_call_operand.hbm [shape: f32[2,8], index: 0, kind: input, shape index: {}]   ;;  %s1714_s1 = inlined_call_operand.hbm [shape: bf16[8,256], index: 1, kind: input, shape index: {}]   ;;  %s1715_s2 = inlined_call_operand.vmem [shape: f32[1,256], index: 2, kind: input, shape index: {}]   ;;  %s1716_s3 = inlined_call_operand.hbm [shape: bf16[256,512], index: 3, kind: input, shape index: {}]   ;;  %s1717_s4 = inlined_call_operand.vmem [shape: f32[1,512], index: 4, kind: input, shape index: {}]   ;;  %s1718_s5 = inlined_call_operand.hbm [shape: bf16[512,128], index: 5, kind: input, shape index: {}]   ;;  %s1719_s6 = inlined_call_operand.vmem [shape: f32[1,128], index: 6, kind: input, shape index: {}]   ;;  %s1720_s7 = inlined_call_operand.hbm [shape: bf16[128,128], index: 7, kind: input, shape index: {}]   ;;  %s1721_s8 = inlined_call_operand.hbm [shape: f32[2,128], index: 8, kind: output, shape index: {}]  }
   0x1   :  { %14 = vsyncpa [#allocation6], 0 }
   0x2   :  { %15 = vsyncpa [#allocation9], 0 }
   0x3   :  { %16 = vsyncpa [#allocation4], 0  ;;  %s1608_s27 = smov [#allocation5]   ;;  %s1609_s29 = smov [#allocation8]  }
   0x4   :  { %s33_s28 = sshll.u32 %s1608_s27, 4  ;;  %s58_s30 = sshll.u32 %s1609_s29, 4  ;;  %s34_s28 = int_to_ptr.vmem [resolvable:$true] %s33_s28  ;;  %s59_s30 = int_to_ptr.vmem [resolvable:$true] %s58_s30 }
   0x5   :  { %s1488_s9 = scalar_lea.vmem %s34_s28, 128  ;;  %p1493_p1 = scmp.lt.s32.totalorder %s34_s28, %s34_s28 }
   0x6   :  { %p1489_p0 = scmp.ne.s32.totalorder %s34_s28, %s1488_s9  ;;  %p1494_p2 = scmp.lt.s32.totalorder %s1488_s9, %s1488_s9 }
   0x8   :  { %p1495_p3 = por %p1494_p2, %p1493_p1 }
   0xa   :  { %p1496_p4 = pnand %p1495_p3, %p1489_p0 }
   0xc   :  { %1499 = shalt.err (!%p1496_p4)
}
   0xd   :  { %36 = dma.hbm_to_vmem [thread:$0]  %s1714_s1, 128, %s34_s28, [#allocation6]  }
   0xe   :  { %s1508_s12 = scalar_lea.vmem %s59_s30, 4096  ;;  %p1513_p6 = scmp.lt.s32.totalorder %s59_s30, %s59_s30 }
   0xf   :  { %p1509_p5 = scmp.ne.s32.totalorder %s59_s30, %s1508_s12  ;;  %p1514_p7 = scmp.lt.s32.totalorder %s1508_s12, %s1508_s12 }
  0x11   :  { %p1515_p8 = por %p1514_p7, %p1513_p6 }
  0x13   :  { %p1516_p9 = pnand %p1515_p8, %p1509_p5 }
  0x15   :  { %1519 = shalt.err (!%p1516_p9)
}
  0x16   :  { %s1610_s13 = smov 64   ;;  %s1611_s14 = smov 4  }
  0x17   :  { %64 = dma.hbm_to_vmem [thread:$0]  %s1718_s5, 4096, %s59_s30, [#allocation9], %s1610_s13, %s1610_s13, %s1611_s14  }
  0x18   :  { %s1612_s17 = smov [#allocation2]   ;;  %s1613_s19 = smov [#allocation7]  }
  0x19   :  { %s23_s18 = sshll.u32 %s1612_s17, 4  ;;  %s44_s1 = sshll.u32 %s1613_s19, 4  ;;  %s24_s18 = int_to_ptr.vmem [resolvable:$true] %s23_s18  ;;  %s45_s1 = int_to_ptr.vmem [resolvable:$true] %s44_s1 }
  0x1a   :  { %s1528_s20 = scalar_lea.vmem %s24_s18, 32  ;;  %p1533_p11 = scmp.lt.s32.totalorder %s24_s18, %s24_s18 }
  0x1b   :  { %p1529_p10 = scmp.ne.s32.totalorder %s24_s18, %s1528_s20  ;;  %p1534_p12 = scmp.lt.s32.totalorder %s1528_s20, %s1528_s20 }
  0x1d   :  { %p1535_p13 = por %p1534_p12, %p1533_p11 }
  0x1f   :  { %p1536_p0 = pnand %p1535_p13, %p1529_p10 }
  0x21   :  { %1539 = shalt.err (!%p1536_p0)
}
  0x22   :  { %26 = dma.hbm_to_vmem [thread:$0]  %s1713_s0, 32, %s24_s18, [#allocation3]  }
  0x23   :  { %s1548_s23 = scalar_lea.vmem %s45_s1, 8192  ;;  %p1553_p2 = scmp.lt.s32.totalorder %s45_s1, %s45_s1 }
  0x24   :  { %p1549_p1 = scmp.ne.s32.totalorder %s45_s1, %s1548_s23  ;;  %p1554_p3 = scmp.lt.s32.totalorder %s1548_s23, %s1548_s23 }
  0x26   :  { %p1555_p4 = por %p1554_p3, %p1553_p2 }
  0x28   :  { %p1556_p5 = pnand %p1555_p4, %p1549_p1 }
  0x2a   :  { %1559 = shalt.err (!%p1556_p5)
}
  0x2b   :  { %s1614_s5 = smov 256   ;;  %s1615_s24 = smov 16  }
  0x2c   :  { %50 = dma.hbm_to_vmem [thread:$0]  %s1716_s3, 8192, %s45_s1, [#allocation6], %s1614_s5, %s1614_s5, %s1615_s24  }
  0x2d   :  { %s1616_s27 = smov [#allocation10]  }
  0x2e   :  { %s72_s28 = sshll.u32 %s1616_s27, 4  ;;  %s73_s28 = int_to_ptr.vmem [resolvable:$true] %s72_s28 }
  0x2f   :  { %s1568_s29 = scalar_lea.vmem %s73_s28, 1024  ;;  %p1573_p7 = scmp.lt.s32.totalorder %s73_s28, %s73_s28 }
  0x30   :  { %p1569_p6 = scmp.ne.s32.totalorder %s73_s28, %s1568_s29  ;;  %p1574_p8 = scmp.lt.s32.totalorder %s1568_s29, %s1568_s29 }
  0x32   :  { %p1575_p9 = por %p1574_p8, %p1573_p7 }
  0x34   :  { %p1576_p10 = pnand %p1575_p9, %p1569_p6 }
  0x36   :  { %1579 = shalt.err (!%p1576_p10)
}
  0x37   :  { %78 = dma.hbm_to_vmem [thread:$0]  %s1720_s7, 1024, %s73_s28, [#allocation9], %s1610_s13, %s1610_s13, %s1611_s14  }
  0x38   :  { %1600 = dma.done.wait [#allocation3], 32  }
  0x39   :  { %1601 = vsyncadd [#allocation3], 4294967264 }
  0x3a   :  { %1602 = dma.done.wait [#allocation6], 8320  }
  0x3b   :  { %1603 = vsyncadd [#allocation6], 4294958976 }
  0x3c   :  { %1604 = dma.done.wait [#allocation9], 5120  }
  0x3d   :  { %1605 = vsyncadd [#allocation9], 4294962176  ;;  %v1617_v0 = vmov 0   ;;  %v97_v1 = vld [vmem:[#allocation5] sm:$0xff]  ;;  %vm119_vm0 = vcmask 1043456   ;;  %vm115_vm1 = vcmask 64512  }
  0x3e   :  { %158 = vmatprep.mubr.bf16.mxu0 %v1617_v0  ;;  %v95_v2 = vld [vmem:[#allocation2] sm:$0x3]  ;;  %v1144_v3 = vcombine.high %v97_v1, %v97_v1  ;;  %v1143_v4 = vcombine.low %v97_v1, %v97_v1  ;;  %v1342_v6 = vld [vmem:[#allocation7 + $0xe8] ss:$16 sps:$4 sm:$0xff]   ;;  %v1344_v7 = vld [vmem:[#allocation7 + $0xec] ss:$16 sps:$4 sm:$0xff]  }
  0x3f   :  { %v1340_v5 = vld [vmem:[#allocation7 + $0xe4] ss:$16 sps:$4 sm:$0xff]   ;;  %v96_v9 = vpack.c.bf16 %v95_v2, %v95_v2  ;;  %v1345_v10 = vld [vmem:[#allocation7 + $0xe0] ss:$16 sps:$4 sm:$0xff]   ;;  %v1350_v12 = vld [vmem:[#allocation7 + $0xcc] ss:$16 sps:$4 sm:$0xff]  }
  0x40   :  { %1145 = vmatprep.subr.msk.bf16.mxu0 %vm119_vm0, %v1144_v3  ;;  %v121_v8 = vsel %vm119_vm0, %v1143_v4, 0  ;;  %577 = vmatprep.subr.bf16.mxu1 %v1340_v5  ;;  %v1346_v11 = vld [vmem:[#allocation7 + $0xc4] ss:$16 sps:$4 sm:$0xff]   ;;  %v1351_v13 = vld [vmem:[#allocation7 + $0xc0] ss:$16 sps:$4 sm:$0xff]   ;;  %vm1010_vm2 = vcmask 1041408  }
  0x41   :  { %141 = vmatpush1.bf16.msra.mxu0 %v121_v8  ;;  %578 = vmatpush1.bf16.msra.mxu1 %v1345_v10  ;;  %v1352_v14 = vld [vmem:[#allocation7 + $0xa4] ss:$16 sps:$4 sm:$0xff]   ;;  %v1348_v15 = vld [vmem:[#allocation7 + $0xc8] ss:$16 sps:$4 sm:$0xff]   ;;  %v1356_v16 = vld [vmem:[#allocation7 + $0xac] ss:$16 sps:$4 sm:$0xff]  }
  0x42   :  { %618 = vmatprep.subr.bf16.mxu0 %v1344_v7  ;;  %579 = vmatprep.subr.bf16.mxu1 %v1346_v11  ;;  %v1357_v17 = vld [vmem:[#allocation7 + $0xa0] ss:$16 sps:$4 sm:$0xff]   ;;  %v1358_v18 = vld [vmem:[#allocation7 + $0x84] ss:$16 sps:$4 sm:$0xff]   ;;  %v1354_v19 = vld [vmem:[#allocation7 + $0xa8] ss:$16 sps:$4 sm:$0xff]  }
  0x43   :  { %v1362_v20 = vld [vmem:[#allocation7 + $0x8c] ss:$16 sps:$4 sm:$0xff]   ;;  %v1363_v21 = vld [vmem:[#allocation7 + $0x80] ss:$16 sps:$4 sm:$0xff]   ;;  %v1364_v22 = vld [vmem:[#allocation7 + $0x64] ss:$16 sps:$4 sm:$0xff]  }
  0x44   :  { %1146 = vmatmul.mubr.msk.bf16.vlgmr.msra.gmra.mxu0 %vm115_vm1, %v96_v9  ;;  %v1360_v23 = vld [vmem:[#allocation7 + $0x88] ss:$16 sps:$4 sm:$0xff]   ;;  %v1368_v24 = vld [vmem:[#allocation7 + $0x6c] ss:$16 sps:$4 sm:$0xff]   ;;  %v1369_v25 = vld [vmem:[#allocation7 + $0x60] ss:$16 sps:$4 sm:$0xff]   ;;  %v100_v9 = vlaneseq }
  0x45   :  { %619 = vmatpush1.bf16.msra.mxu0 %v1342_v6  ;;  %580 = vmatpush1.bf16.msra.mxu1 %v1351_v13  ;;  %v1370_v26 = vld [vmem:[#allocation7 + $0x44] ss:$16 sps:$4 sm:$0xff]   ;;  %v1366_v27 = vld [vmem:[#allocation7 + $0x68] ss:$16 sps:$4 sm:$0xff]   ;;  %v1374_v28 = vld [vmem:[#allocation7 + $0x4c] ss:$16 sps:$4 sm:$0xff]  }
  0x46   :  { %620 = vmatprep.subr.bf16.mxu0 %v1350_v12  ;;  %581 = vmatprep.subr.bf16.mxu1 %v1352_v14  ;;  %v1375_v29 = vld [vmem:[#allocation7 + $0x40] ss:$16 sps:$4 sm:$0xff]   ;;  %v1376_v30 = vld [vmem:[#allocation7 + $0x24] ss:$16 sps:$4 sm:$0xff]   ;;  %v1372_v31 = vld [vmem:[#allocation7 + $0x48] ss:$16 sps:$4 sm:$0xff]  }
  0x47   :  { %v1380_v32 = vld [vmem:[#allocation7 + $0x2c] ss:$16 sps:$4 sm:$0xff]   ;;  %v1381_v33 = vld [vmem:[#allocation7 + $0x20] ss:$16 sps:$4 sm:$0xff]   ;;  %v1382_v34 = vld [vmem:[#allocation7 + $0x4] ss:$16 sps:$4 sm:$0xff]  }
  0x48   :  { %v1378_v35 = vld [vmem:[#allocation7 + $0x28] ss:$16 sps:$4 sm:$0xff]   ;;  %v1386_v36 = vld [vmem:[#allocation7 + $0xc] ss:$16 sps:$4 sm:$0xff]   ;;  %v1387_v37 = vld [vmem:[#allocation7] ss:$16 sps:$4 sm:$0xff]  }
  0x49   :  { %621 = vmatpush1.bf16.msra.mxu0 %v1348_v15  ;;  %582 = vmatpush1.bf16.msra.mxu1 %v1357_v17  ;;  %v1388_v38 = vld [vmem:[#allocation7 + $0x1e4] ss:$16 sps:$4 sm:$0xff]   ;;  %v1384_v39 = vld [vmem:[#allocation7 + $0x8] ss:$16 sps:$4 sm:$0xff]   ;;  %v1392_v40 = vld [vmem:[#allocation7 + $0x1ec] ss:$16 sps:$4 sm:$0xff]  }
  0x4a   :  { %622 = vmatprep.subr.bf16.mxu0 %v1356_v16  ;;  %583 = vmatprep.subr.bf16.mxu1 %v1358_v18  ;;  %v1393_v41 = vld [vmem:[#allocation7 + $0x1e0] ss:$16 sps:$4 sm:$0xff]   ;;  %v1394_v42 = vld [vmem:[#allocation7 + $0x1c4] ss:$16 sps:$4 sm:$0xff]   ;;  %v1390_v43 = vld [vmem:[#allocation7 + $0x1e8] ss:$16 sps:$4 sm:$0xff]  }
  0x4b   :  { %v1398_v44 = vld [vmem:[#allocation7 + $0x1cc] ss:$16 sps:$4 sm:$0xff]   ;;  %v1399_v45 = vld [vmem:[#allocation7 + $0x1c0] ss:$16 sps:$4 sm:$0xff]   ;;  %v1396_v46 = vld [vmem:[#allocation7 + $0x1c8] ss:$16 sps:$4 sm:$0xff]  }
  0x4c   :  { %v1400_v47 = vld [vmem:[#allocation7 + $0x1a4] ss:$16 sps:$4 sm:$0xff]   ;;  %v1404_v48 = vld [vmem:[#allocation7 + $0x1ac] ss:$16 sps:$4 sm:$0xff]   ;;  %v1405_v49 = vld [vmem:[#allocation7 + $0x1a0] ss:$16 sps:$4 sm:$0xff]  }
  0x4d   :  { %623 = vmatpush1.bf16.msra.mxu0 %v1354_v19  ;;  %584 = vmatpush1.bf16.msra.mxu1 %v1363_v21  ;;  %v1406_v50 = vld [vmem:[#allocation7 + $0x184] ss:$16 sps:$4 sm:$0xff]   ;;  %v1402_v51 = vld [vmem:[#allocation7 + $0x1a8] ss:$16 sps:$4 sm:$0xff]   ;;  %v1410_v52 = vld [vmem:[#allocation7 + $0x18c] ss:$16 sps:$4 sm:$0xff]  }
  0x4e   :  { %624 = vmatprep.subr.bf16.mxu0 %v1362_v20  ;;  %585 = vmatprep.subr.bf16.mxu1 %v1364_v22  ;;  %v1411_v53 = vld [vmem:[#allocation7 + $0x180] ss:$16 sps:$4 sm:$0xff]   ;;  %v1412_v54 = vld [vmem:[#allocation7 + $0x164] ss:$16 sps:$4 sm:$0xff]   ;;  %v1408_v55 = vld [vmem:[#allocation7 + $0x188] ss:$16 sps:$4 sm:$0xff]  }
  0x4f   :  { %v1416_v56 = vld [vmem:[#allocation7 + $0x16c] ss:$16 sps:$4 sm:$0xff]   ;;  %v1417_v57 = vld [vmem:[#allocation7 + $0x160] ss:$16 sps:$4 sm:$0xff]   ;;  %v1418_v58 = vld [vmem:[#allocation7 + $0x144] ss:$16 sps:$4 sm:$0xff]  }
  0x50   :  { %v1414_v59 = vld [vmem:[#allocation7 + $0x168] ss:$16 sps:$4 sm:$0xff]   ;;  %v1422_v60 = vld [vmem:[#allocation7 + $0x14c] ss:$16 sps:$4 sm:$0xff]   ;;  %v1423_v61 = vld [vmem:[#allocation7 + $0x140] ss:$16 sps:$4 sm:$0xff]  }
  0x51   :  { %625 = vmatpush1.bf16.msra.mxu0 %v1360_v23  ;;  %586 = vmatpush1.bf16.msra.mxu1 %v1369_v25  ;;  %v1420_v62 = vld [vmem:[#allocation7 + $0x148] ss:$16 sps:$4 sm:$0xff]   ;;  %v1424_v63 = vld [vmem:[#allocation7 + $0x124] ss:$16 sps:$4 sm:$0xff]   ;;  %v1428_v0 = vld [vmem:[#allocation7 + $0x12c] ss:$16 sps:$4 sm:$0xff]  }
  0x52   :  { %626 = vmatprep.subr.bf16.mxu0 %v1368_v24  ;;  %587 = vmatprep.subr.bf16.mxu1 %v1370_v26  ;;  %v1426_v1 = vld [vmem:[#allocation7 + $0x128] ss:$16 sps:$4 sm:$0xff]   ;;  %v1429_v2 = vld [vmem:[#allocation7 + $0x120] ss:$16 sps:$4 sm:$0xff]   ;;  %v1430_v3 = vld [vmem:[#allocation7 + $0x104] ss:$16 sps:$4 sm:$0xff]  }
  0x53   :  { %v1434_v4 = vld [vmem:[#allocation7 + $0x10c] ss:$16 sps:$4 sm:$0xff]   ;;  %v1432_v5 = vld [vmem:[#allocation7 + $0x108] ss:$16 sps:$4 sm:$0xff]   ;;  %v1435_v6 = vld [vmem:[#allocation7 + $0x100] ss:$16 sps:$4 sm:$0xff]  }
  0x54   :  { %v1436_v7 = vld [vmem:[#allocation8 + $0x78] sm:$0xff]   ;;  %v1687_v10 = vshrl.u32 %v100_v9, 7  ;;  %v98_v12 = vld [vmem:[%s1715_s2] sm:$0x3]  ;;  %vm1619_vm3 = vmmov 0  }
  0x55   :  { %627 = vmatpush1.bf16.msra.mxu0 %v1366_v27  ;;  %588 = vmatpush1.bf16.msra.mxu1 %v1375_v29  ;;  %v1437_v8 = vld [vmem:[#allocation8 + $0xf8] sm:$0xff]   ;;  %v1441_v29 = vld [vmem:[#allocation8 + $0xf0] sm:$0xff]  }
  0x56   :  { %628 = vmatprep.subr.bf16.mxu0 %v1374_v28  ;;  %589 = vmatprep.subr.bf16.mxu1 %v1376_v30  ;;  %v102_v11 = vsub.s32 0, %v1687_v10  ;;  %v106_v13 = vsub.s32 1, %v1687_v10  ;;  %v1438_v25 = vld [vmem:[#allocation8 + $0x38] sm:$0xff]   ;;  %v1440_v28 = vld [vmem:[#allocation8 + $0x70] sm:$0xff]  }
  0x57   :  { %v1439_v26 = vld [vmem:[#allocation8 + $0xb8] sm:$0xff]   ;;  %v1442_v30 = vld [vmem:[#allocation8 + $0x30] sm:$0xff]  }
  0x58   :  { %v103_v14 = vrot.slane %v98_v12, %v102_v11  ;;  %v107_v15 = vrot.slane %v98_v12, %v106_v13 }
  0x59   :  { %629 = vmatpush1.bf16.msra.mxu0 %v1372_v31  ;;  %590 = vmatpush1.bf16.msra.mxu1 %v1381_v33  ;;  %v1443_v31 = vld [vmem:[#allocation8 + $0xb0] sm:$0xff]   ;;  %v1445_v33 = vld [vmem:[#allocation8 + $0xe8] sm:$0xff]  }
  0x5a   :  { %630 = vmatprep.subr.bf16.mxu0 %v1380_v32  ;;  %591 = vmatprep.subr.bf16.mxu1 %v1382_v34  ;;  %v1444_v32 = vld [vmem:[#allocation8 + $0x68] sm:$0xff]  }
  0x5b   :  { %v1446_v34 = vld [vmem:[#allocation8 + $0x28] sm:$0xff]  }
  0x5d   :  { %631 = vmatpush1.bf16.msra.mxu0 %v1378_v35  ;;  %592 = vmatpush1.bf16.msra.mxu1 %v1387_v37  ;;  %v1447_v35 = vld [vmem:[#allocation8 + $0xa8] sm:$0xff]   ;;  %v1449_v37 = vld [vmem:[#allocation8 + $0xe0] sm:$0xff]  }
  0x5e   :  { %632 = vmatprep.subr.bf16.mxu0 %v1386_v36  ;;  %593 = vmatprep.subr.bf16.mxu1 %v1388_v38  ;;  %v1448_v36 = vld [vmem:[#allocation8 + $0x60] sm:$0xff]  }
  0x5f   :  { %v1450_v38 = vld [vmem:[#allocation8 + $0x20] sm:$0xff]  }
  0x61   :  { %633 = vmatpush1.bf16.msra.mxu0 %v1384_v39  ;;  %594 = vmatpush2.bf16.msra.mxu1 %v1393_v41  ;;  %v1451_v39 = vld [vmem:[#allocation8 + $0xa0] sm:$0xff]   ;;  %v1453_v41 = vld [vmem:[#allocation8 + $0xd8] sm:$0xff]  }
  0x62   :  { %634 = vmatprep.subr.bf16.mxu0 %v1392_v40  ;;  %595 = vmatprep.subr.bf16.mxu1 %v1394_v42  ;;  %v1452_v40 = vld [vmem:[#allocation8 + $0x58] sm:$0xff]  }
  0x63   :  { %v1454_v42 = vld [vmem:[#allocation8 + $0x18] sm:$0xff]  }
  0x65   :  { %635 = vmatpush2.bf16.msra.mxu0 %v1390_v43  ;;  %596 = vmatpush2.bf16.msra.mxu1 %v1399_v45  ;;  %v1455_v43 = vld [vmem:[#allocation8 + $0x98] sm:$0xff]   ;;  %v1457_v45 = vld [vmem:[#allocation8 + $0xd0] sm:$0xff]  }
  0x66   :  { %636 = vmatprep.subr.bf16.mxu0 %v1398_v44  ;;  %597 = vmatprep.subr.bf16.mxu1 %v1400_v47  ;;  %v1456_v44 = vld [vmem:[#allocation8 + $0x50] sm:$0xff]  }
  0x67   :  { %v1459_v47 = vld [vmem:[#allocation8 + $0x90] sm:$0xff]  }
  0x69   :  { %637 = vmatpush2.bf16.msra.mxu0 %v1396_v46  ;;  %598 = vmatpush2.bf16.msra.mxu1 %v1405_v49  ;;  %v1458_v46 = vld [vmem:[#allocation8 + $0x10] sm:$0xff]   ;;  %v1461_v49 = vld [vmem:[#allocation8 + $0xc8] sm:$0xff]  }
  0x6a   :  { %638 = vmatprep.subr.bf16.mxu0 %v1404_v48  ;;  %599 = vmatprep.subr.bf16.mxu1 %v1406_v50  ;;  %v1460_v48 = vld [vmem:[#allocation8 + $0x48] sm:$0xff]  }
  0x6b   :  { %v1462_v50 = vld [vmem:[#allocation8 + $0x8] sm:$0xff]  }
  0x6d   :  { %639 = vmatpush2.bf16.msra.mxu0 %v1402_v51  ;;  %600 = vmatpush2.bf16.msra.mxu1 %v1411_v53  ;;  %v1463_v51 = vld [vmem:[#allocation8 + $0x88] sm:$0xff]   ;;  %v1465_v53 = vld [vmem:[#allocation8 + $0xc0] sm:$0xff]  }
  0x6e   :  { %640 = vmatprep.subr.bf16.mxu0 %v1410_v52  ;;  %601 = vmatprep.subr.bf16.mxu1 %v1412_v54  ;;  %v1464_v52 = vld [vmem:[#allocation8 + $0x40] sm:$0xff]  }
  0x6f   :  { %v1466_v54 = vld [vmem:[#allocation8] sm:$0xff]  }
  0x71   :  { %641 = vmatpush2.bf16.msra.mxu0 %v1408_v55  ;;  %602 = vmatpush2.bf16.msra.mxu1 %v1417_v57  ;;  %v1467_v55 = vld [vmem:[#allocation8 + $0x80] sm:$0xff]   ;;  %v235_v57 = vld [vmem:[%s1717_s4] sm:$0xf] }
  0x72   :  { %642 = vmatprep.subr.bf16.mxu0 %v1416_v56  ;;  %603 = vmatprep.subr.bf16.mxu1 %v1418_v58  ;;  %v247_v56 = vsub.s32 2, %v1687_v10  ;;  %v251_v58 = vsub.s32 3, %v1687_v10 }
  0x75   :  { %643 = vmatpush2.bf16.msra.mxu0 %v1414_v59  ;;  %604 = vmatpush2.bf16.msra.mxu1 %v1423_v61  ;;  %v240_v59 = vrot.slane %v235_v57, %v102_v11  ;;  %v244_v61 = vrot.slane %v235_v57, %v106_v13 }
  0x76   :  { %644 = vmatprep.subr.bf16.mxu0 %v1422_v60  ;;  %605 = vmatprep.subr.bf16.mxu1 %v1424_v63  ;;  %v248_v60 = vrot.slane %v235_v57, %v247_v56 }
  0x79   :  { %645 = vmatpush2.bf16.msra.mxu0 %v1420_v62  ;;  %606 = vmatpush2.bf16.msra.mxu1 %v1429_v2  ;;  %v252_v62 = vrot.slane %v235_v57, %v251_v58 }
  0x7a   :  { %646 = vmatprep.subr.bf16.mxu0 %v1428_v0  ;;  %607 = vmatprep.subr.bf16.mxu1 %v1430_v3 }
  0x7d   :  { %647 = vmatpush2.bf16.msra.mxu0 %v1426_v1  ;;  %608 = vmatpush2.bf16.msra.mxu1 %v1435_v6 }
  0x7e   :  { %648 = vmatprep.subr.bf16.mxu0 %v1434_v4  ;;  %1252 = vmatprep.subr.bf16.mxu1 %v1436_v7 }
  0x81   :  { %649 = vmatpush2.bf16.msra.mxu0 %v1432_v5 }
  0x82   :  { %1274 = vmatprep.subr.bf16.mxu0 %v1437_v8 }
 0x104   :  { %v160_v16 = vpop.f32.mrf.mxu0 }
 0x105   :  { %v161_v17 = vadd.f32 %v160_v16, %v103_v14 }
 0x106   :  { %v162_v18 = vpop.f32.mrf.mxu0 }
 0x107   :  { %v163_v19 = vadd.f32 %v162_v18, %v107_v15  ;;  %v167_v20 = vmax.f32 %v161_v17, 0.0 }
 0x108   :  { %v164_v21 = vpop.f32.mrf.mxu0 }
 0x109   :  { %v168_v22 = vmax.f32 %v163_v19, 0.0  ;;  %v169_v27 = vpack.c.bf16 %v167_v20, %v167_v20  ;;  %v1468_v19 = vld [vmem:[#allocation10 + $0x38] sm:$0xff]   ;;  %v1618_v20 = vmov 0.0   ;;  %v1469_v21 = vld [vmem:[#allocation10 + $0x30] sm:$0xff]  }
 0x10a   :  { %v165_v23 = vpop.f32.mrf.mxu0 }
 0x10b   :  { %v170_v24 = vpack.c.bf16 %v168_v22, %v168_v22  ;;  %v1470_v22 = vld [vmem:[#allocation10 + $0x28] sm:$0xff]  }
 0x10d   :  { %609 = vmatprep.mubr.bf16.mxu1 %v170_v24  ;;  %650 = vmatprep.mubr.bf16.mxu0 %v170_v24 }
 0x10e   :  { %610 = vmatmul.mubr.bf16.vlgmr.msra.gmra.mxu1 %v169_v27  ;;  %651 = vmatmul.mubr.bf16.vlgmr.msra.gmra.mxu0 %v169_v27 }
 0x10f   :  { %1253 = vmatpush3.bf16.msra.mxu1 %v1438_v25  ;;  %1275 = vmatpush3.bf16.msra.mxu0 %v1439_v26  ;;  %v1211_v25 = vld [vmem:[%s1719_s6] ss:$0 sm:$0xff]  ;;  %s1620_s6 = smov [#allocation11]  }
 0x110   :  { %1254 = vmatprep.subr.bf16.mxu1 %v1440_v28  ;;  %1276 = vmatprep.subr.bf16.mxu0 %v1441_v29  ;;  %s1132_s11 = sshll.u32 %s1620_s6, 4  ;;  %s1133_s11 = int_to_ptr.vmem [resolvable:$true] %s1132_s11 }
 0x111   :  { %s1580_s12 = scalar_lea.vmem %s1133_s11, 32  ;;  %p1585_p12 = scmp.lt.s32.totalorder %s1133_s11, %s1133_s11 }
 0x112   :  { %p1581_p11 = scmp.ne.s32.totalorder %s1133_s11, %s1580_s12  ;;  %p1586_p13 = scmp.lt.s32.totalorder %s1580_s12, %s1580_s12 }
 0x113   :  { %1255 = vmatpush3.bf16.msra.mxu1 %v1442_v30  ;;  %1277 = vmatpush3.bf16.msra.mxu0 %v1443_v31 }
 0x114   :  { %1256 = vmatprep.subr.bf16.mxu1 %v1444_v32  ;;  %1278 = vmatprep.subr.bf16.mxu0 %v1445_v33  ;;  %p1587_p0 = por %p1586_p13, %p1585_p12 }
 0x116   :  { %p1588_p1 = pnand %p1587_p0, %p1581_p11 }
 0x117   :  { %1257 = vmatpush3.bf16.msra.mxu1 %v1446_v34  ;;  %1279 = vmatpush3.bf16.msra.mxu0 %v1447_v35 }
 0x118   :  { %1258 = vmatprep.subr.bf16.mxu1 %v1448_v36  ;;  %1280 = vmatprep.subr.bf16.mxu0 %v1449_v37  ;;  %v1471_v37 = vld [vmem:[#allocation10 + $0x20] sm:$0xff]  }
 0x11b   :  { %1259 = vmatpush3.bf16.msra.mxu1 %v1450_v38  ;;  %1281 = vmatpush3.bf16.msra.mxu0 %v1451_v39  ;;  %v1472_v38 = vld [vmem:[#allocation10 + $0x18] sm:$0xff]   ;;  %v1473_v39 = vld [vmem:[#allocation10 + $0x10] sm:$0xff]  }
 0x11c   :  { %1260 = vmatprep.subr.bf16.mxu1 %v1452_v40  ;;  %1282 = vmatprep.subr.bf16.mxu0 %v1453_v41  ;;  %v1474_v40 = vld [vmem:[#allocation10 + $0x8] sm:$0xff]   ;;  %v1475_v41 = vld [vmem:[#allocation10] sm:$0xff]  }
 0x11f   :  { %1261 = vmatpush3.bf16.msra.mxu1 %v1454_v42  ;;  %1283 = vmatpush3.bf16.msra.mxu0 %v1455_v43 }
 0x120   :  { %1262 = vmatprep.subr.bf16.mxu1 %v1456_v44  ;;  %1284 = vmatprep.subr.bf16.mxu0 %v1457_v45 }
 0x123   :  { %1263 = vmatpush3.bf16.msra.mxu1 %v1458_v46  ;;  %1285 = vmatpush3.bf16.msra.mxu0 %v1459_v47 }
 0x124   :  { %1264 = vmatprep.subr.bf16.mxu1 %v1460_v48  ;;  %1286 = vmatprep.subr.bf16.mxu0 %v1461_v49 }
 0x127   :  { %1265 = vmatpush3.bf16.msra.mxu1 %v1462_v50  ;;  %1287 = vmatpush3.bf16.msra.mxu0 %v1463_v51 }
 0x128   :  { %1266 = vmatprep.subr.bf16.mxu1 %v1464_v52  ;;  %1288 = vmatprep.subr.bf16.mxu0 %v1465_v53 }
 0x12b   :  { %1267 = vmatpush3.bf16.msra.mxu1 %v1466_v54  ;;  %1289 = vmatpush3.bf16.msra.mxu0 %v1467_v55 }
 0x12c   :  { %1305 = vmatprep.subr.bf16.mxu1 %v1618_v20 }
 0x1ce   :  { %v611_v63 = vpop.f32.mrf.mxu1  ;;  %v652_v0 = vpop.f32.mrf.mxu0 }
 0x1cf   :  { %v612_v1 = vadd.f32 %v611_v63, %v240_v59  ;;  %v653_v2 = vadd.f32 %v652_v0, %v248_v60 }
 0x1d0   :  { %v613_v3 = vpop.f32.mrf.mxu1  ;;  %v654_v4 = vpop.f32.mrf.mxu0 }
 0x1d1   :  { %v614_v5 = vadd.f32 %v613_v3, %v244_v61  ;;  %v655_v6 = vadd.f32 %v654_v4, %v252_v62  ;;  %v659_v7 = vmax.f32 %v612_v1, 0.0  ;;  %v661_v8 = vmax.f32 %v653_v2, 0.0 }
 0x1d2   :  { %v615_v9 = vpop.f32.mrf.mxu1  ;;  %v656_v12 = vpop.f32.mrf.mxu0 }
 0x1d3   :  { %v660_v14 = vmax.f32 %v614_v5, 0.0  ;;  %v662_v15 = vmax.f32 %v655_v6, 0.0  ;;  %v663_v13 = vpack.c.bf16 %v659_v7, %v659_v7  ;;  %v665_v18 = vpack.c.bf16 %v661_v8, %v661_v8 }
 0x1d4   :  { %v616_v11 = vpop.f32.mrf.mxu1  ;;  %v657_v16 = vpop.f32.mrf.mxu0 }
 0x1d5   :  { %v664_v17 = vpack.c.bf16 %v660_v14, %v660_v14  ;;  %v666_v10 = vpack.c.bf16 %v662_v15, %v662_v15 }
 0x1d7   :  { %962 = vmatprep.mubr.bf16.mxu1 %v664_v17  ;;  %1002 = vmatprep.mubr.bf16.mxu0 %v666_v10 }
 0x1d8   :  { %963 = vmatmul.mubr.bf16.vlgmr.msra.gmra.mxu1 %v663_v13  ;;  %1003 = vmatmul.mubr.bf16.vlgmr.msra.gmra.mxu0 %v665_v18 }
 0x1d9   :  { %1306 = vmatpush3.bf16.msra.mxu1 %v1468_v19  ;;  %1321 = vmatprep.mubr.msk.bf16.mxu1 %vm1619_vm3, %v1618_v20 }
 0x1da   :  { %1307 = vmatprep.subr.bf16.mxu1 %v1618_v20 }
 0x1dd   :  { %1308 = vmatpush3.bf16.msra.mxu1 %v1469_v21 }
 0x1de   :  { %1309 = vmatprep.subr.bf16.mxu1 %v1618_v20 }
 0x1e1   :  { %1310 = vmatpush3.bf16.msra.mxu1 %v1470_v22 }
 0x1e2   :  { %1311 = vmatprep.subr.bf16.mxu1 %v1618_v20 }
 0x1e5   :  { %1312 = vmatpush3.bf16.msra.mxu1 %v1471_v37 }
 0x1e6   :  { %1313 = vmatprep.subr.bf16.mxu1 %v1618_v20 }
 0x1e9   :  { %1314 = vmatpush3.bf16.msra.mxu1 %v1472_v38 }
 0x1ea   :  { %1315 = vmatprep.subr.bf16.mxu1 %v1618_v20 }
 0x1ed   :  { %1316 = vmatpush3.bf16.msra.mxu1 %v1473_v39 }
 0x1ee   :  { %1317 = vmatprep.subr.bf16.mxu1 %v1618_v20 }
 0x1f1   :  { %1318 = vmatpush3.bf16.msra.mxu1 %v1474_v40 }
 0x1f2   :  { %1319 = vmatprep.subr.bf16.mxu1 %v1618_v20 }
 0x1f5   :  { %1320 = vmatpush3.bf16.msra.mxu1 %v1475_v41 }
 0x298   :  { %v1268_v23 = vpop.f32.mrf.mxu1  ;;  %v1290_v24 = vpop.f32.mrf.mxu0 }
 0x29a   :  { %v1269_v26 = vpop.f32.mrf.mxu1  ;;  %v1291_v27 = vpop.f32.mrf.mxu0 }
 0x29b   :  { %v1270_v28 = vadd.f32 %v1269_v26, %v1268_v23  ;;  %v1292_v32 = vadd.f32 %v1291_v27, %v1290_v24 }
 0x29c   :  { %v1271_v29 = vpop.f32.mrf.mxu1  ;;  %v1293_v30 = vpop.f32.mrf.mxu0 }
 0x29d   :  { %v965_v31 = vadd.f32 %v1270_v28, %v1211_v25 }
 0x29e   :  { %v1272_v33 = vpop.f32.mrf.mxu1  ;;  %v1294_v34 = vpop.f32.mrf.mxu0 }
 0x29f   :  { %v1005_v35 = vadd.f32 %v1292_v32, %v965_v31 }
 0x2a1   :  { %v1011_v36 = vsel %vm1010_vm2, %v1005_v35, -inf }
 0x2a2   :  { %1012 = vmax.xlane.f32.xlu0 %v1011_v36 }
 0x32b   :  { %v1013_v42 = vpop.xlane.xlu0 %1012 }
 0x32c   :  { %v1014_v43 = vsub.f32 %v1005_v35, %v1013_v42 }
 0x32e   :  { %v1015_v44 = vmul.f32 1.442695, %v1014_v43 }
 0x330   :  { %1476 = vpow2.f32 %v1015_v44 }
 0x33d   :  { %v1477_v45 = vpop.eup %1476 }
 0x33e   :  { %v1017_v46 = vpack.c.bf16 %v1477_v45, %v1477_v45 }
 0x340   :  { %1322 = vmatmul.mubr.bf16.vlgmr.msra.gmra.mxu1 %v1017_v46 }
 0x400   :  { %v1116_v47 = vpop.f32.mrf.mxu1 }
 0x401   :  { %v1122_v48 = vmax.f32 %v1116_v47, 1e-30 }
 0x402   :  { %v1323_v49 = vpop.f32.mrf.mxu1 }
 0x403   :  { %1478 = vrcp.f32 %v1122_v48 }
 0x404   :  { %v1119_v50 = vpop.f32.mrf.mxu1 }
 0x406   :  { %v1324_v51 = vpop.f32.mrf.mxu1 }
 0x410   :  { %v1479_v52 = vpop.eup %1478 }
 0x411   :  { %v1124_v53 = vmul.f32 %v1479_v52, %v1477_v45 }
 0x413   :  { %1125 = vst [vmem:[#allocation11] sm:$0x3] %v1124_v53 }
 0x414   :  { %1591 = shalt.err (!%p1588_p1)
}
 0x415   :  { %1135 = dma.vmem_to_hbm [thread:$0]  %s1133_s11, 32, %s1721_s8, [#allocation4]  }
 0x416   :  { %1606 = dma.done.wait [#allocation4], 32  }
 0x417   :  { %1607 = vsyncadd [#allocation4], 4294967264 }
 0x418   :  { %1139 = vsyncpa [#allocation3], 1 }
 0x419   :  { %1140 = vsyncpa [#allocation6], 1 }
 0x41a   :  { %1141 = vsyncpa [#allocation9], 1 }
 0x41b   :  { %1142 = vsyncpa [#allocation4], 1 }

</bundles_post_ra>
